<compile_context>
chip_gen: v6e
topology: v6e:2x2x1
jax: 0.10.0
libtpu: 0.0.40
codegen_flags: <defaults>
</compile_context>

<pallas_src>
import jax
import jax.numpy as jnp
from jax.experimental import pallas as pl
from jax.experimental.pallas import tpu as pltpu

LEAKY_SLOPE = 0.01   # F.leaky_relu default
DROP_P = 0.5         # F.dropout(p=0.5), training=True (functional default)


def _leaky_relu(v):
    return jnp.where(v >= 0, v, LEAKY_SLOPE * v)


# ---------------------------------------------------------------------------
# Kernels
# ---------------------------------------------------------------------------

def transform_kernel(x_ref, w1_ref, wd_ref, bd_ref, xw1_ref, ident_ref):
    """Row tile: XW1 = X @ W1 (bf16 out) and ident = X @ Wd + bd (f32 out)."""
    x = x_ref[...]                                           # bf16
    xw1_ref[...] = jnp.dot(
        x, w1_ref[...], preferred_element_type=jnp.float32
    ).astype(xw1_ref.dtype)
    ident_ref[...] = (
        jnp.dot(x, wd_ref[...], preferred_element_type=jnp.float32) + bd_ref[...]
    ).astype(ident_ref.dtype)


def gcn1_kernel(a_ref, xw_ref, b_ref, mask_ref, w2_ref, o_ref, acc_ref):
    """Layer-1 aggregation (K-blocked) + fused epilogue:
       out = (dropout(leaky_relu(A @ XW1 + b1))) @ W2   (bf16 out)."""
    k = pl.program_id(1)

    @pl.when(k == 0)
    def _init():
        acc_ref[...] = jnp.zeros_like(acc_ref)

    acc_ref[...] += jnp.dot(
        a_ref[...], xw_ref[...], preferred_element_type=jnp.float32
    )

    @pl.when(k == pl.num_programs(1) - 1)
    def _epilogue():
        h = _leaky_relu(acc_ref[...] + b_ref[...]).astype(jnp.bfloat16)
        h = h * mask_ref[...]                                # bf16 mask (0.0 / 2.0)
        o_ref[...] = jnp.dot(
            h, w2_ref[...], preferred_element_type=jnp.float32
        ).astype(o_ref.dtype)


def gcn2_kernel(a_ref, xw_ref, b_ref, ident_ref, o_ref, acc_ref):
    """Layer-2 aggregation (K-blocked) + residual:
       out = leaky_relu(A @ XW2 + b2) + ident."""
    k = pl.program_id(1)

    @pl.when(k == 0)
    def _init():
        acc_ref[...] = jnp.zeros_like(acc_ref)

    acc_ref[...] += jnp.dot(
        a_ref[...], xw_ref[...], preferred_element_type=jnp.float32
    )

    @pl.when(k == pl.num_programs(1) - 1)
    def _epilogue():
        o_ref[...] = (
            _leaky_relu(acc_ref[...] + b_ref[...]) + ident_ref[...]
        ).astype(o_ref.dtype)


def fused_kernel(a_ref, x_ref, w1_ref, b1_ref, mask_ref, w2_ref, b2_ref,
                 wd_ref, bd_ref, o_ref):
    """Small-graph fast path: whole forward in one VMEM-resident kernel."""
    x = x_ref[...]                                           # bf16
    a = a_ref[...]                                           # bf16
    xw1 = jnp.dot(x, w1_ref[...], preferred_element_type=jnp.float32
                  ).astype(jnp.bfloat16)
    h1 = _leaky_relu(
        jnp.dot(a, xw1, preferred_element_type=jnp.float32) + b1_ref[...]
    ).astype(jnp.bfloat16) * mask_ref[...]
    xw2 = jnp.dot(h1, w2_ref[...], preferred_element_type=jnp.float32
                  ).astype(jnp.bfloat16)
    h2 = _leaky_relu(
        jnp.dot(a, xw2, preferred_element_type=jnp.float32) + b2_ref[...]
    )
    ident = jnp.dot(x, wd_ref[...], preferred_element_type=jnp.float32) + bd_ref[...]
    o_ref[...] = (h2 + ident).astype(o_ref.dtype)


# ---------------------------------------------------------------------------
# Plain-JAX glue
# ---------------------------------------------------------------------------

def gcn_norm_dense(edge_idx, num_nodes):
    """Dense symmetric GCN normalization: A_hat = D^-1/2 (A + I) D^-1/2.
    TODO(synk): duplicate edges are binarized (not weight-summed like PyG
    scatter) — fine for simple edge lists, a fidelity gap for multigraphs."""
    src, dst = edge_idx[0], edge_idx[1]
    a = jnp.zeros((num_nodes, num_nodes), jnp.float32)
    a = a.at[dst, src].set(1.0)
    a = jnp.maximum(a, jnp.eye(num_nodes, dtype=jnp.float32))   # self-loops
    deg = a.sum(axis=1)
    dinv = jnp.where(deg > 0, 1.0 / jnp.sqrt(deg), 0.0)
    return dinv[:, None] * a * dinv[None, :]


def _round_up(v, m):
    return (v + m - 1) // m * m


def _pad2(arr, rows, cols, dtype):
    out = jnp.zeros((rows, cols), dtype)
    return out.at[: arr.shape[0], : arr.shape[1]].set(arr.astype(dtype))


def _vmem_limit_bytes():
    """Per-generation VMEM budget: ~48 MiB on v7x (64 MiB/TC), ~96 MiB on
    v5e/v6e (128 MiB)."""
    try:
        cap = int(pltpu.get_tpu_info().vmem_capacity_bytes)
    except Exception:
        cap = 64 << 20
    return int(min(cap * 3 // 4, 100 << 20))


# ---------------------------------------------------------------------------
# Wrapper
# ---------------------------------------------------------------------------

def resgcn_encoder(x, edge_idx, params, dropout_key, training=True,
                   tile_m=256, fuse_max_n=1024):
    n, nfeat = x.shape
    nhid = params["w1"].shape[1]
    nhid2 = params["w2"].shape[1]

    # Lane-dense padding (multiples of 128) and row tiling.
    f_pad = _round_up(nfeat, 128)
    h_pad = _round_up(nhid, 128)
    h2_pad = _round_up(nhid2, 128)

    tm = min(tile_m, _round_up(n, 128))        # tile_m multiple of 128 assumed
    n_pad = _round_up(n, tm)
    if n_pad > tm and (n_pad // tm) % 2 == 1:
        n_pad += tm                            # even tile count → both v7x TCs busy
    tk = tm                                    # aggregation (K) block size

    # Padded operands: everything feeding the MXU is bf16; biases stay f32.
    a_hat = gcn_norm_dense(edge_idx, n)
    ap = _pad2(a_hat, n_pad, n_pad, jnp.bfloat16)
    xp = _pad2(x, n_pad, f_pad, jnp.bfloat16)
    w1p = _pad2(params["w1"], f_pad, h_pad, jnp.bfloat16)
    b1p = _pad2(params["b1"], 1, h_pad, jnp.float32)
    w2p = _pad2(params["w2"], h_pad, h2_pad, jnp.bfloat16)
    b2p = _pad2(params["b2"], 1, h2_pad, jnp.float32)
    wdp = _pad2(params["wd"], f_pad, h2_pad, jnp.bfloat16)
    bdp = _pad2(params["bd"], 1, h2_pad, jnp.float32)

    # Dropout mask (already scaled by 1/(1-p)); 0.0 / 2.0 are exact in bf16.
    # TODO(synk): replace with in-kernel pltpu.prng_seed + prng_random_bits.
    if training:
        keep = jax.random.bernoulli(dropout_key, 1.0 - DROP_P, (n_pad, h_pad))
        mask = (keep.astype(jnp.float32) * (1.0 / (1.0 - DROP_P))).astype(jnp.bfloat16)
    else:
        mask = jnp.ones((n_pad, h_pad), jnp.bfloat16)

    vmem_limit = _vmem_limit_bytes()

    # ---------------- small-graph fast path: single fused call --------------
    if n_pad <= fuse_max_n:
        out_p = pl.pallas_call(
            fused_kernel,
            out_shape=jax.ShapeDtypeStruct((n_pad, h2_pad), jnp.float32),
            compiler_params=pltpu.CompilerParams(vmem_limit_bytes=vmem_limit),
        )(ap, xp, w1p, b1p, mask, w2p, b2p, wdp, bdp)
        return out_p[:n, :nhid2]

    # ---------------- general tiled path ------------------------------------
    gm = n_pad // tm
    gk = n_pad // tk
    row_params = pltpu.CompilerParams(
        dimension_semantics=("parallel",), vmem_limit_bytes=vmem_limit)
    agg_params = pltpu.CompilerParams(
        dimension_semantics=("parallel", "arbitrary"), vmem_limit_bytes=vmem_limit)

    # Pass 1: XW1 = X @ W1 and ident = X @ Wd + bd (row-tiled; X loaded once).
    xw1, ident = pl.pallas_call(
        transform_kernel,
        out_shape=(jax.ShapeDtypeStruct((n_pad, h_pad), jnp.bfloat16),
                   jax.ShapeDtypeStruct((n_pad, h2_pad), jnp.float32)),
        grid=(gm,),
        in_specs=[
            pl.BlockSpec((tm, f_pad), lambda i: (i, 0)),        # X row tile
            pl.BlockSpec((f_pad, h_pad), lambda i: (0, 0)),     # W1
            pl.BlockSpec((f_pad, h2_pad), lambda i: (0, 0)),    # Wd
            pl.BlockSpec((1, h2_pad), lambda i: (0, 0)),        # bd
        ],
        out_specs=(pl.BlockSpec((tm, h_pad), lambda i: (i, 0)),
                   pl.BlockSpec((tm, h2_pad), lambda i: (i, 0))),
        compiler_params=row_params,
    )(xp, w1p, wdp, bdp)

    # Pass 2: XW2 = dropout(leaky_relu(A @ XW1 + b1)) @ W2  (K-blocked).
    xw2 = pl.pallas_call(
        gcn1_kernel,
        out_shape=jax.ShapeDtypeStruct((n_pad, h2_pad), jnp.bfloat16),
        grid=(gm, gk),
        in_specs=[
            pl.BlockSpec((tm, tk), lambda i, k: (i, k)),        # A_hat tile
            pl.BlockSpec((tk, h_pad), lambda i, k: (k, 0)),     # XW1 K-block
            pl.BlockSpec((1, h_pad), lambda i, k: (0, 0)),      # b1
            pl.BlockSpec((tm, h_pad), lambda i, k: (i, 0)),     # dropout mask
            pl.BlockSpec((h_pad, h2_pad), lambda i, k: (0, 0)), # W2
        ],
        out_specs=pl.BlockSpec((tm, h2_pad), lambda i, k: (i, 0)),
        scratch_shapes=[pltpu.VMEM((tm, h_pad), jnp.float32)],
        compiler_params=agg_params,
    )(ap, xw1, b1p, mask, w2p)

    # Pass 3: out = leaky_relu(A @ XW2 + b2) + ident  (K-blocked residual).
    out_p = pl.pallas_call(
        gcn2_kernel,
        out_shape=jax.ShapeDtypeStruct((n_pad, h2_pad), jnp.float32),
        grid=(gm, gk),
        in_specs=[
            pl.BlockSpec((tm, tk), lambda i, k: (i, k)),        # A_hat tile
            pl.BlockSpec((tk, h2_pad), lambda i, k: (k, 0)),    # XW2 K-block
            pl.BlockSpec((1, h2_pad), lambda i, k: (0, 0)),     # b2
            pl.BlockSpec((tm, h2_pad), lambda i, k: (i, 0)),    # ident row tile
        ],
        out_specs=pl.BlockSpec((tm, h2_pad), lambda i, k: (i, 0)),
        scratch_shapes=[pltpu.VMEM((tm, h2_pad), jnp.float32)],
        compiler_params=agg_params,
    )(ap, xw2, b2p, ident)

    return out_p[:n, :nhid2]


# ---------------------------------------------------------------------------
# Params / reference
# ---------------------------------------------------------------------------

def init_params(key, nfeat, nhid):
    nhid2 = nhid // 2
    k1, k2, k3 = jax.random.split(key, 3)

    def glorot(k, shape):
        scale = jnp.sqrt(6.0 / (shape[0] + shape[1]))
        return jax.random.uniform(k, shape, jnp.float32, -scale, scale)

    return {
        "w1": glorot(k1, (nfeat, nhid)),        # GCNConv(nfeat, nhid)
        "b1": jnp.zeros((1, nhid), jnp.float32),
        "w2": glorot(k2, (nhid, nhid2)),        # GCNConv(nhid, nhid//2)
        "b2": jnp.zeros((1, nhid2), jnp.float32),
        "wd": glorot(k3, (nfeat, nhid2)),       # nn.Linear(nfeat, nhid//2), pre-transposed
        "bd": jnp.zeros((1, nhid2), jnp.float32),
    }


def resgcn_reference(x, edge_idx, params):
    """Plain-JAX f32 forward with dropout disabled (numerical check)."""
    a = gcn_norm_dense(edge_idx, x.shape[0])
    identity = x @ params["wd"] + params["bd"]
    h = _leaky_relu(a @ (x @ params["w1"]) + params["b1"])
    h = _leaky_relu(a @ (h @ params["w2"]) + params["b2"])
    return h + identity


if __name__ == "__main__":
    key = jax.random.PRNGKey(0)
    k_x, k_e, k_p, k_d = jax.random.split(key, 4)

    NFEAT, NHID = 16, 32
    params = init_params(k_p, NFEAT, NHID)

    # ---- small graph (fused single-call fast path) --------------------------
    N = 32
    x = jax.random.normal(k_x, (N, NFEAT), jnp.float32)
    pairs = jax.random.randint(k_e, (2, 64), 0, N, dtype=jnp.int32)
    edge_idx = jnp.concatenate([pairs, pairs[::-1]], axis=1)      # undirected

    ref = resgcn_reference(x, edge_idx, params)
    out_eval = resgcn_encoder(x, edge_idx, params, k_d, training=False)
    jax.block_until_ready(out_eval)
    assert out_eval.shape == (N, NHID // 2)
    assert float(jnp.max(jnp.abs(out_eval - ref))) < 0.2   # bf16 operands on MXU

    # ---- larger graph, forced through the tiled / K-blocked path ------------
    N2 = 300
    x2 = jax.random.normal(k_x, (N2, NFEAT), jnp.float32)
    pairs2 = jax.random.randint(k_e, (2, 900), 0, N2, dtype=jnp.int32)
    edge_idx2 = jnp.concatenate([pairs2, pairs2[::-1]], axis=1)

    ref2 = resgcn_reference(x2, edge_idx2, params)
    out2 = resgcn_encoder(x2, edge_idx2, params, k_d, training=False, fuse_max_n=0)
    jax.block_until_ready(out2)
    assert out2.shape == (N2, NHID // 2)
    assert float(jnp.max(jnp.abs(out2 - ref2))) < 0.2

    # Module-faithful forward (F.dropout functional default: training=True).
    out = resgcn_encoder(x, edge_idx, params, k_d, training=True)
    jax.block_until_ready(out)
    assert out.shape == (N, NHID // 2) and out.dtype == jnp.float32
    print("KERNEL_OK")
</pallas_src>

<mosaic_0001>
module attributes {stable_mosaic.version = 11 : i64} {
  func.func @fused_kernel(%arg0: memref<128x128xbf16, #tpu.memory_space<vmem>>, %arg1: memref<128x128xbf16, #tpu.memory_space<vmem>>, %arg2: memref<128x128xbf16, #tpu.memory_space<vmem>>, %arg3: memref<1x128xf32, #tpu.memory_space<vmem>>, %arg4: memref<128x128xbf16, #tpu.memory_space<vmem>>, %arg5: memref<128x128xbf16, #tpu.memory_space<vmem>>, %arg6: memref<1x128xf32, #tpu.memory_space<vmem>>, %arg7: memref<128x128xbf16, #tpu.memory_space<vmem>>, %arg8: memref<1x128xf32, #tpu.memory_space<vmem>>, %arg9: memref<128x128xf32, #tpu.memory_space<vmem>>) attributes {dimension_semantics = [], scalar_prefetch = 0 : i64, scratch_operands = 0 : i64, tpu.core_type = #tpu.core_type<tc>} {
    %c0 = arith.constant 0 : index
    %c0_0 = arith.constant 0 : index
    %0 = vector.load %arg1[%c0, %c0_0] : memref<128x128xbf16, #tpu.memory_space<vmem>>, vector<128x128xbf16>
    %c0_1 = arith.constant 0 : index
    %c0_2 = arith.constant 0 : index
    %1 = vector.load %arg0[%c0_1, %c0_2] : memref<128x128xbf16, #tpu.memory_space<vmem>>, vector<128x128xbf16>
    %c0_3 = arith.constant 0 : index
    %c0_4 = arith.constant 0 : index
    %2 = vector.load %arg2[%c0_3, %c0_4] : memref<128x128xbf16, #tpu.memory_space<vmem>>, vector<128x128xbf16>
    %cst = arith.constant dense<0.000000e+00> : vector<128x128xf32>
    %3 = tpu.matmul %0, %2, %cst {dimension_numbers = #tpu.dot_dimension_numbers<[1], [0], [0], [1], [0, 0, 1, 1], [], []>} : vector<128x128xbf16>, vector<128x128xbf16>, vector<128x128xf32> -> vector<128x128xf32>
    %4 = arith.truncf %3 : vector<128x128xf32> to vector<128x128xbf16>
    %cst_5 = arith.constant dense<0.000000e+00> : vector<128x128xf32>
    %5 = tpu.matmul %1, %4, %cst_5 {dimension_numbers = #tpu.dot_dimension_numbers<[1], [0], [0], [1], [0, 0, 1, 1], [], []>} : vector<128x128xbf16>, vector<128x128xbf16>, vector<128x128xf32> -> vector<128x128xf32>
    %c0_6 = arith.constant 0 : index
    %c0_7 = arith.constant 0 : index
    %6 = vector.load %arg3[%c0_6, %c0_7] : memref<1x128xf32, #tpu.memory_space<vmem>>, vector<1x128xf32>
    %7 = vector.broadcast %6 : vector<1x128xf32> to vector<128x128xf32>
    %8 = arith.addf %5, %7 : vector<128x128xf32>
    %cst_8 = arith.constant 0.000000e+00 : f32
    %9 = vector.broadcast %cst_8 : f32 to vector<128x128xf32>
    %10 = arith.cmpf oge, %8, %9 : vector<128x128xf32>
    %cst_9 = arith.constant 0.00999999977 : f32
    %11 = vector.broadcast %cst_9 : f32 to vector<128x128xf32>
    %12 = arith.mulf %11, %8 : vector<128x128xf32>
    %13 = arith.select %10, %8, %12 : vector<128x128xi1>, vector<128x128xf32>
    %14 = arith.truncf %13 : vector<128x128xf32> to vector<128x128xbf16>
    %c0_10 = arith.constant 0 : index
    %c0_11 = arith.constant 0 : index
    %15 = vector.load %arg4[%c0_10, %c0_11] : memref<128x128xbf16, #tpu.memory_space<vmem>>, vector<128x128xbf16>
    %16 = arith.mulf %14, %15 : vector<128x128xbf16>
    %c0_12 = arith.constant 0 : index
    %c0_13 = arith.constant 0 : index
    %17 = vector.load %arg5[%c0_12, %c0_13] : memref<128x128xbf16, #tpu.memory_space<vmem>>, vector<128x128xbf16>
    %cst_14 = arith.constant dense<0.000000e+00> : vector<128x128xf32>
    %18 = tpu.matmul %16, %17, %cst_14 {dimension_numbers = #tpu.dot_dimension_numbers<[1], [0], [0], [1], [0, 0, 1, 1], [], []>} : vector<128x128xbf16>, vector<128x128xbf16>, vector<128x128xf32> -> vector<128x128xf32>
    %19 = arith.truncf %18 : vector<128x128xf32> to vector<128x128xbf16>
    %cst_15 = arith.constant dense<0.000000e+00> : vector<128x128xf32>
    %20 = tpu.matmul %1, %19, %cst_15 {dimension_numbers = #tpu.dot_dimension_numbers<[1], [0], [0], [1], [0, 0, 1, 1], [], []>} : vector<128x128xbf16>, vector<128x128xbf16>, vector<128x128xf32> -> vector<128x128xf32>
    %c0_16 = arith.constant 0 : index
    %c0_17 = arith.constant 0 : index
    %21 = vector.load %arg6[%c0_16, %c0_17] : memref<1x128xf32, #tpu.memory_space<vmem>>, vector<1x128xf32>
    %22 = vector.broadcast %21 : vector<1x128xf32> to vector<128x128xf32>
    %23 = arith.addf %20, %22 : vector<128x128xf32>
    %cst_18 = arith.constant 0.000000e+00 : f32
    %24 = vector.broadcast %cst_18 : f32 to vector<128x128xf32>
    %25 = arith.cmpf oge, %23, %24 : vector<128x128xf32>
    %cst_19 = arith.constant 0.00999999977 : f32
    %26 = vector.broadcast %cst_19 : f32 to vector<128x128xf32>
    %27 = arith.mulf %26, %23 : vector<128x128xf32>
    %28 = arith.select %25, %23, %27 : vector<128x128xi1>, vector<128x128xf32>
    %c0_20 = arith.constant 0 : index
    %c0_21 = arith.constant 0 : index
    %29 = vector.load %arg7[%c0_20, %c0_21] : memref<128x128xbf16, #tpu.memory_space<vmem>>, vector<128x128xbf16>
    %cst_22 = arith.constant dense<0.000000e+00> : vector<128x128xf32>
    %30 = tpu.matmul %0, %29, %cst_22 {dimension_numbers = #tpu.dot_dimension_numbers<[1], [0], [0], [1], [0, 0, 1, 1], [], []>} : vector<128x128xbf16>, vector<128x128xbf16>, vector<128x128xf32> -> vector<128x128xf32>
    %c0_23 = arith.constant 0 : index
    %c0_24 = arith.constant 0 : index
    %31 = vector.load %arg8[%c0_23, %c0_24] : memref<1x128xf32, #tpu.memory_space<vmem>>, vector<1x128xf32>
    %32 = vector.broadcast %31 : vector<1x128xf32> to vector<128x128xf32>
    %33 = arith.addf %30, %32 : vector<128x128xf32>
    %34 = arith.addf %28, %33 : vector<128x128xf32>
    %c0_25 = arith.constant 0 : index
    %c0_26 = arith.constant 0 : index
    %35 = vector.load %arg9[%c0_25, %c0_26] : memref<128x128xf32, #tpu.memory_space<vmem>>, vector<128x128xf32>
    tpu.vector_store %arg9[%c0_25, %c0_26], %34 {strides = array<i32>} : memref<128x128xf32, #tpu.memory_space<vmem>>, vector<128x128xf32>,
    return
  }
}

</mosaic_0001>

<bundles_post_ra>
// kernel: tpu_custom_call.1
= control target key start
LH: loop header
LB: loop body
LE: loop exit
PB: predicated region body
PF: predicated region fallthrough
CT: control target
= control target key end

     0   :  { %14 = vsyncpa [#allocation3], 0  ;;  %s1977_s0 = inlined_call_operand.hbm [shape: bf16[128,128], index: 0, kind: input, shape index: {}]   ;;  %s1978_s1 = inlined_call_operand.hbm [shape: bf16[128,128], index: 1, kind: input, shape index: {}]   ;;  %s1979_s2 = inlined_call_operand.hbm [shape: bf16[128,128], index: 2, kind: input, shape index: {}]   ;;  %s1980_s3 = inlined_call_operand.vmem [shape: f32[1,128], index: 3, kind: input, shape index: {}]   ;;  %s1981_s4 = inlined_call_operand.hbm [shape: bf16[128,128], index: 4, kind: input, shape index: {}]   ;;  %s1982_s5 = inlined_call_operand.hbm [shape: bf16[128,128], index: 5, kind: input, shape index: {}]   ;;  %s1983_s6 = inlined_call_operand.vmem [shape: f32[1,128], index: 6, kind: input, shape index: {}]   ;;  %s1984_s7 = inlined_call_operand.hbm [shape: bf16[128,128], index: 7, kind: input, shape index: {}]   ;;  %s1985_s8 = inlined_call_operand.vmem [shape: f32[1,128], index: 8, kind: input, shape index: {}]   ;;  %s1986_s9 = inlined_call_operand.hbm [shape: f32[128,128], index: 9, kind: output, shape index: {}]  }
   0x1   :  { %15 = vsyncpa [#allocation6], 0 }
   0x2   :  { %16 = vsyncpa [#allocation9], 0 }
   0x3   :  { %17 = vsyncpa [#allocation12], 0 }
   0x4   :  { %18 = vsyncpa [#allocation4], 0  ;;  %s1702_s30 = smov [#allocation5]   ;;  %s1703_s11 = smov [#allocation8]  }
   0x5   :  { %s36_s10 = sshll.u32 %s1702_s30, 4  ;;  %s62_s12 = sshll.u32 %s1703_s11, 4  ;;  %s37_s10 = int_to_ptr.vmem [resolvable:$true] %s36_s10  ;;  %s63_s12 = int_to_ptr.vmem [resolvable:$true] %s62_s12 }
   0x6   :  { %s1560_s13 = scalar_lea.vmem %s37_s10, 1024  ;;  %p1565_p1 = scmp.lt.s32.totalorder %s37_s10, %s37_s10 }
   0x7   :  { %p1561_p0 = scmp.ne.s32.totalorder %s37_s10, %s1560_s13  ;;  %p1566_p2 = scmp.lt.s32.totalorder %s1560_s13, %s1560_s13 }
   0x9   :  { %p1567_p3 = por %p1566_p2, %p1565_p1 }
   0xb   :  { %p1568_p4 = pnand %p1567_p3, %p1561_p0 }
   0xd   :  { %1571 = shalt.err (!%p1568_p4)
}
   0xe   :  { %s1704_s14 = smov 64   ;;  %s1705_s15 = smov 4  }
   0xf   :  { %42 = dma.hbm_to_vmem [thread:$0]  %s1978_s1, 1024, %s37_s10, [#allocation6], %s1704_s14, %s1704_s14, %s1705_s15  }
  0x10   :  { %s1580_s18 = scalar_lea.vmem %s63_s12, 1024  ;;  %p1585_p6 = scmp.lt.s32.totalorder %s63_s12, %s63_s12 }
  0x11   :  { %p1581_p5 = scmp.ne.s32.totalorder %s63_s12, %s1580_s18  ;;  %p1586_p7 = scmp.lt.s32.totalorder %s1580_s18, %s1580_s18 }
  0x13   :  { %p1587_p8 = por %p1586_p7, %p1585_p6 }
  0x15   :  { %p1588_p9 = pnand %p1587_p8, %p1581_p5 }
  0x17   :  { %1591 = shalt.err (!%p1588_p9)
}
  0x18   :  { %68 = dma.hbm_to_vmem [thread:$0]  %s1981_s4, 1024, %s63_s12, [#allocation9], %s1704_s14, %s1704_s14, %s1705_s15  }
  0x19   :  { %s1706_s21 = smov [#allocation2]   ;;  %s1707_s23 = smov [#allocation7]  }
  0x1a   :  { %s24_s22 = sshll.u32 %s1706_s21, 4  ;;  %s48_s24 = sshll.u32 %s1707_s23, 4  ;;  %s25_s22 = int_to_ptr.vmem [resolvable:$true] %s24_s22  ;;  %s49_s24 = int_to_ptr.vmem [resolvable:$true] %s48_s24 }
  0x1b   :  { %s1600_s1 = scalar_lea.vmem %s25_s22, 1024  ;;  %p1605_p11 = scmp.lt.s32.totalorder %s25_s22, %s25_s22 }
  0x1c   :  { %p1601_p10 = scmp.ne.s32.totalorder %s25_s22, %s1600_s1  ;;  %p1606_p12 = scmp.lt.s32.totalorder %s1600_s1, %s1600_s1 }
  0x1e   :  { %p1607_p13 = por %p1606_p12, %p1605_p11 }
  0x20   :  { %p1608_p0 = pnand %p1607_p13, %p1601_p10 }
  0x22   :  { %1611 = shalt.err (!%p1608_p0)
}
  0x23   :  { %30 = dma.hbm_to_vmem [thread:$0]  %s1977_s0, 1024, %s25_s22, [#allocation3], %s1704_s14, %s1704_s14, %s1705_s15  }
  0x24   :  { %s1620_s4 = scalar_lea.vmem %s49_s24, 1024  ;;  %p1625_p2 = scmp.lt.s32.totalorder %s49_s24, %s49_s24 }
  0x25   :  { %p1621_p1 = scmp.ne.s32.totalorder %s49_s24, %s1620_s4  ;;  %p1626_p3 = scmp.lt.s32.totalorder %s1620_s4, %s1620_s4 }
  0x27   :  { %p1627_p4 = por %p1626_p3, %p1625_p2 }
  0x29   :  { %p1628_p5 = pnand %p1627_p4, %p1621_p1 }
  0x2b   :  { %1631 = shalt.err (!%p1628_p5)
}
  0x2c   :  { %54 = dma.hbm_to_vmem [thread:$0]  %s1979_s2, 1024, %s49_s24, [#allocation6], %s1704_s14, %s1704_s14, %s1705_s15  }
  0x2d   :  { %s1708_s29 = smov [#allocation10]   ;;  %s1709_s10 = smov [#allocation11]  }
  0x2e   :  { %s74_s30 = sshll.u32 %s1708_s29, 4  ;;  %s88_s11 = sshll.u32 %s1709_s10, 4  ;;  %s75_s30 = int_to_ptr.vmem [resolvable:$true] %s74_s30  ;;  %s89_s11 = int_to_ptr.vmem [resolvable:$true] %s88_s11 }
  0x2f   :  { %s1640_s0 = scalar_lea.vmem %s75_s30, 1024  ;;  %p1645_p7 = scmp.lt.s32.totalorder %s75_s30, %s75_s30 }
  0x30   :  { %p1641_p6 = scmp.ne.s32.totalorder %s75_s30, %s1640_s0  ;;  %p1646_p8 = scmp.lt.s32.totalorder %s1640_s0, %s1640_s0 }
  0x32   :  { %p1647_p9 = por %p1646_p8, %p1645_p7 }
  0x34   :  { %p1648_p10 = pnand %p1647_p9, %p1641_p6 }
  0x36   :  { %1651 = shalt.err (!%p1648_p10)
}
  0x37   :  { %80 = dma.hbm_to_vmem [thread:$0]  %s1982_s5, 1024, %s75_s30, [#allocation9], %s1704_s14, %s1704_s14, %s1705_s15  }
  0x38   :  { %s1660_s2 = scalar_lea.vmem %s89_s11, 1024  ;;  %p1665_p12 = scmp.lt.s32.totalorder %s89_s11, %s89_s11 }
  0x39   :  { %p1661_p11 = scmp.ne.s32.totalorder %s89_s11, %s1660_s2  ;;  %p1666_p13 = scmp.lt.s32.totalorder %s1660_s2, %s1660_s2 }
  0x3b   :  { %p1667_p0 = por %p1666_p13, %p1665_p12 }
  0x3d   :  { %p1668_p1 = pnand %p1667_p0, %p1661_p11 }
  0x3f   :  { %1671 = shalt.err (!%p1668_p1)
}
  0x40   :  { %94 = dma.hbm_to_vmem [thread:$0]  %s1984_s7, 1024, %s89_s11, [#allocation12], %s1704_s14, %s1704_s14, %s1705_s15  }
  0x41   :  { %1692 = dma.done.wait [#allocation3], 1024  }
  0x42   :  { %1693 = vsyncadd [#allocation3], 4294966272 }
  0x43   :  { %1694 = dma.done.wait [#allocation6], 2048  }
  0x44   :  { %1695 = vsyncadd [#allocation6], 4294965248 }
  0x45   :  { %1696 = dma.done.wait [#allocation9], 2048  }
  0x46   :  { %1697 = vsyncadd [#allocation9], 4294965248 }
  0x47   :  { %1698 = dma.done.wait [#allocation12], 1024  }
  0x48   :  { %1699 = vsyncadd [#allocation12], 4294966272  ;;  %v1504_v0 = vld [vmem:[#allocation7 + $0x38] sm:$0xff]   ;;  %v1505_v1 = vld [vmem:[#allocation7 + $0x30] sm:$0xff]  }
  0x49   :  { %1317 = vmatprep.subr.bf16.mxu0 %v1504_v0  ;;  %v1506_v2 = vld [vmem:[#allocation7 + $0x28] sm:$0xff]   ;;  %v1507_v3 = vld [vmem:[#allocation7 + $0x20] sm:$0xff]   ;;  %v1508_v5 = vld [vmem:[#allocation7 + $0x18] sm:$0xff]  }
  0x4a   :  { %1318 = vmatpush3.bf16.msra.mxu0 %v1504_v0  ;;  %v1799_v4 = vld [vmem:[#allocation5] sm:$0xff]   ;;  %v1509_v6 = vld [vmem:[#allocation7 + $0x10] sm:$0xff]   ;;  %v1510_v7 = vld [vmem:[#allocation7 + $0x8] sm:$0xff]  }
  0x4b   :  { %1319 = vmatprep.subr.bf16.mxu0 %v1505_v1  ;;  %1333 = vmatprep.mubr.bf16.mxu0 %v1799_v4  ;;  %v1511_v8 = vld [vmem:[#allocation7] sm:$0xff]   ;;  %v1802_v9 = vld [vmem:[#allocation5 + $0x8] sm:$0xff]   ;;  %v1804_v10 = vld [vmem:[#allocation5 + $0x10] sm:$0xff]  }
  0x4c   :  { %v1808_v11 = vld [vmem:[#allocation5 + $0x18] sm:$0xff]   ;;  %v1810_v12 = vld [vmem:[#allocation5 + $0x20] sm:$0xff]   ;;  %v1814_v13 = vld [vmem:[#allocation5 + $0x28] sm:$0xff]  }
  0x4d   :  { %v1816_v14 = vld [vmem:[#allocation5 + $0x30] sm:$0xff]   ;;  %v1820_v15 = vld [vmem:[#allocation5 + $0x38] sm:$0xff]   ;;  %v1823_v16 = vld [vmem:[#allocation2] sm:$0xff]  }
  0x4e   :  { %1320 = vmatpush3.bf16.msra.mxu0 %v1505_v1  ;;  %1365 = vmatprep.mubr.bf16.mxu1 %v1823_v16  ;;  %v1528_v17 = vld [vmem:[#allocation10 + $0x38] sm:$0xff]   ;;  %v1529_v18 = vld [vmem:[#allocation10 + $0x30] sm:$0xff]   ;;  %v1530_v19 = vld [vmem:[#allocation10 + $0x28] sm:$0xff]  }
  0x4f   :  { %1321 = vmatprep.subr.bf16.mxu0 %v1506_v2  ;;  %v1531_v20 = vld [vmem:[#allocation10 + $0x20] sm:$0xff]   ;;  %v1826_v45 = vld [vmem:[#allocation2 + $0x8] sm:$0xff]   ;;  %v1828_v46 = vld [vmem:[#allocation2 + $0x10] sm:$0xff]  }
  0x50   :  { %v1832_v47 = vld [vmem:[#allocation2 + $0x18] sm:$0xff]   ;;  %v1834_v48 = vld [vmem:[#allocation2 + $0x20] sm:$0xff]   ;;  %v1838_v49 = vld [vmem:[#allocation2 + $0x28] sm:$0xff]  }
  0x51   :  { %v1840_v50 = vld [vmem:[#allocation2 + $0x30] sm:$0xff]   ;;  %v1844_v51 = vld [vmem:[#allocation2 + $0x38] sm:$0xff]   ;;  %v1535_v54 = vld [vmem:[#allocation10 + $0x8] sm:$0xff]  }
  0x52   :  { %1322 = vmatpush3.bf16.msra.mxu0 %v1506_v2  ;;  %v1532_v52 = vld [vmem:[#allocation10 + $0x18] sm:$0xff]   ;;  %v1534_v53 = vld [vmem:[#allocation10 + $0x10] sm:$0xff]   ;;  %v1536_v55 = vld [vmem:[#allocation10] sm:$0xff]  }
  0x53   :  { %1323 = vmatprep.subr.bf16.mxu0 %v1507_v3  ;;  %v1851_v56 = vld [vmem:[%s1980_s3] ss:$0 sm:$0xff] }
  0x56   :  { %1324 = vmatpush3.bf16.msra.mxu0 %v1507_v3 }
  0x57   :  { %1325 = vmatprep.subr.bf16.mxu0 %v1508_v5 }
  0x5a   :  { %1326 = vmatpush3.bf16.msra.mxu0 %v1508_v5 }
  0x5b   :  { %1327 = vmatprep.subr.bf16.mxu0 %v1509_v6 }
  0x5e   :  { %1328 = vmatpush3.bf16.msra.mxu0 %v1509_v6 }
  0x5f   :  { %1329 = vmatprep.subr.bf16.mxu0 %v1510_v7 }
  0x62   :  { %1330 = vmatpush3.bf16.msra.mxu0 %v1510_v7 }
  0x63   :  { %1331 = vmatprep.subr.bf16.mxu0 %v1511_v8 }
  0x66   :  { %1332 = vmatpush3.bf16.msra.mxu0 %v1511_v8 }
  0x67   :  { %1381 = vmatprep.subr.bf16.mxu0 %v1528_v17 }
  0x69   :  { %1334 = vmatmul.mubr.bf16.vlgmr.msra.gmra.mxu0 %v1802_v9 }
  0x6a   :  { %1337 = vmatprep.mubr.bf16.mxu0 %v1804_v10  ;;  %1382 = vmatpush3.bf16.msra.mxu0 %v1528_v17 }
  0x6b   :  { %1383 = vmatprep.subr.bf16.mxu0 %v1529_v18 }
  0x6e   :  { %1384 = vmatpush3.bf16.msra.mxu0 %v1529_v18  ;;  %v1533_v18 = vld [vmem:[#allocation8 + $0x8] sm:$0xff]  }
  0x6f   :  { %1385 = vmatprep.subr.bf16.mxu0 %v1530_v19 }
  0x71   :  { %1338 = vmatmul.mubr.bf16.gmra.mxu0 %v1808_v11 }
  0x72   :  { %1341 = vmatprep.mubr.bf16.mxu0 %v1810_v12  ;;  %1386 = vmatpush3.bf16.msra.mxu0 %v1530_v19 }
  0x73   :  { %1387 = vmatprep.subr.bf16.mxu0 %v1531_v20 }
  0x76   :  { %1388 = vmatpush3.bf16.msra.mxu0 %v1531_v20  ;;  %v1537_v20 = vld [vmem:[#allocation8] sm:$0xff]  }
  0x77   :  { %1389 = vmatprep.subr.bf16.mxu0 %v1532_v52 }
  0x79   :  { %1342 = vmatmul.mubr.bf16.gmra.mxu0 %v1814_v13 }
  0x7a   :  { %1345 = vmatprep.mubr.bf16.mxu0 %v1816_v14  ;;  %1390 = vmatpush3.bf16.msra.mxu0 %v1532_v52 }
  0x7b   :  { %1391 = vmatprep.subr.bf16.mxu0 %v1534_v53 }
  0x7e   :  { %1392 = vmatpush3.bf16.msra.mxu0 %v1534_v53 }
  0x7f   :  { %1393 = vmatprep.subr.bf16.mxu0 %v1535_v54 }
  0x81   :  { %1346 = vmatmul.mubr.bf16.gmra.mxu0 %v1820_v15 }
  0x82   :  { %1394 = vmatpush3.bf16.msra.mxu0 %v1535_v54 }
  0x83   :  { %1395 = vmatprep.subr.bf16.mxu0 %v1536_v55 }
  0x86   :  { %1396 = vmatpush3.bf16.msra.mxu0 %v1536_v55 }
 0x129   :  { %v1335_v21 = vpop.f32.mrf.mxu0 }
 0x12b   :  { %v294_v22 = vpop.f32.mrf.mxu0 }
 0x12d   :  { %v1336_v23 = vpop.f32.mrf.mxu0 }
 0x12e   :  { %v358_v43 = vpack.c.bf16 %v1336_v23, %v1335_v21 }
 0x12f   :  { %v297_v24 = vpop.f32.mrf.mxu0 }
 0x130   :  { %v357_v44 = vpack.c.bf16 %v297_v24, %v294_v22 }
 0x131   :  { %v1339_v25 = vpop.f32.mrf.mxu0 }
 0x133   :  { %v310_v26 = vpop.f32.mrf.mxu0 }
 0x135   :  { %v1340_v27 = vpop.f32.mrf.mxu0 }
 0x136   :  { %v360_v41 = vpack.c.bf16 %v1340_v27, %v1339_v25 }
 0x137   :  { %v313_v28 = vpop.f32.mrf.mxu0 }
 0x138   :  { %v359_v42 = vpack.c.bf16 %v313_v28, %v310_v26 }
 0x139   :  { %v1343_v29 = vpop.f32.mrf.mxu0 }
 0x13b   :  { %v326_v30 = vpop.f32.mrf.mxu0 }
 0x13d   :  { %v1344_v31 = vpop.f32.mrf.mxu0 }
 0x13e   :  { %v362_v39 = vpack.c.bf16 %v1344_v31, %v1343_v29 }
 0x13f   :  { %v329_v32 = vpop.f32.mrf.mxu0 }
 0x140   :  { %v361_v40 = vpack.c.bf16 %v329_v32, %v326_v30 }
 0x141   :  { %v1347_v33 = vpop.f32.mrf.mxu0 }
 0x143   :  { %v342_v34 = vpop.f32.mrf.mxu0 }
 0x145   :  { %v1348_v35 = vpop.f32.mrf.mxu0 }
 0x146   :  { %v364_v36 = vpack.c.bf16 %v1348_v35, %v1347_v33 }
 0x147   :  { %v345_v37 = vpop.f32.mrf.mxu0 }
 0x148   :  { %v363_v38 = vpack.c.bf16 %v345_v37, %v342_v34  ;;  %1349 = vmatprep.subr.bf16.mxu1 %v364_v36 }
 0x149   :  { %1350 = vmatpush3.bf16.msra.mxu1 %v364_v36 }
 0x14a   :  { %1351 = vmatprep.subr.bf16.mxu1 %v363_v38 }
 0x14d   :  { %1352 = vmatpush3.bf16.msra.mxu1 %v363_v38 }
 0x14e   :  { %1353 = vmatprep.subr.bf16.mxu1 %v362_v39 }
 0x151   :  { %1354 = vmatpush3.bf16.msra.mxu1 %v362_v39 }
 0x152   :  { %1355 = vmatprep.subr.bf16.mxu1 %v361_v40 }
 0x155   :  { %1356 = vmatpush3.bf16.msra.mxu1 %v361_v40  ;;  %v1538_v40 = vld [vmem:[#allocation8 + $0x10] sm:$0xff]  }
 0x156   :  { %1357 = vmatprep.subr.bf16.mxu1 %v360_v41 }
 0x159   :  { %1358 = vmatpush3.bf16.msra.mxu1 %v360_v41 }
 0x15a   :  { %1359 = vmatprep.subr.bf16.mxu1 %v359_v42 }
 0x15d   :  { %1360 = vmatpush3.bf16.msra.mxu1 %v359_v42  ;;  %v1539_v42 = vld [vmem:[#allocation8 + $0x18] sm:$0xff]  }
 0x15e   :  { %1361 = vmatprep.subr.bf16.mxu1 %v358_v43 }
 0x161   :  { %1362 = vmatpush3.bf16.msra.mxu1 %v358_v43 }
 0x162   :  { %1363 = vmatprep.subr.bf16.mxu1 %v357_v44 }
 0x165   :  { %1364 = vmatpush3.bf16.msra.mxu1 %v357_v44 }
 0x168   :  { %1366 = vmatmul.mubr.bf16.vlgmr.msra.gmra.mxu1 %v1826_v45 }
 0x169   :  { %1369 = vmatprep.mubr.bf16.mxu1 %v1828_v46 }
 0x170   :  { %1370 = vmatmul.mubr.bf16.gmra.mxu1 %v1832_v47 }
 0x171   :  { %1373 = vmatprep.mubr.bf16.mxu1 %v1834_v48 }
 0x178   :  { %1374 = vmatmul.mubr.bf16.gmra.mxu1 %v1838_v49 }
 0x179   :  { %1377 = vmatprep.mubr.bf16.mxu1 %v1840_v50 }
 0x180   :  { %1378 = vmatmul.mubr.bf16.gmra.mxu1 %v1844_v51 }
 0x181   :  { %1429 = vmatprep.mubr.bf16.mxu1 %v1823_v16 }
 0x228   :  { %v1367_v57 = vpop.f32.mrf.mxu1 }
 0x229   :  { %v463_v58 = vadd.f32 %v1367_v57, %v1851_v56 }
 0x22a   :  { %v454_v59 = vpop.f32.mrf.mxu1 }
 0x22b   :  { %v455_v60 = vadd.f32 %v1851_v56, %v454_v59  ;;  %v535_v61 = vmul.f32 0.01, %v463_v58  ;;  %vm519_vm0 = vcmp.ge.f32.partialorder %v463_v58, 0.0 }
 0x22c   :  { %v1368_v62 = vpop.f32.mrf.mxu1 }
 0x22d   :  { %v466_v63 = vadd.f32 %v1368_v62, %v1851_v56  ;;  %v533_v1 = vmul.f32 0.01, %v455_v60  ;;  %v551_v5 = vsel %vm519_vm0, %v463_v58, %v535_v61  ;;  %vm517_vm2 = vcmp.ge.f32.partialorder %v455_v60, 0.0 }
 0x22e   :  { %v457_v0 = vpop.f32.mrf.mxu1 }
 0x22f   :  { %vm520_vm1 = vcmp.ge.f32.partialorder %v466_v63, 0.0  ;;  %v536_v2 = vmul.f32 0.01, %v466_v63  ;;  %v458_v3 = vadd.f32 %v1851_v56, %v457_v0  ;;  %v549_v21 = vsel %vm517_vm2, %v455_v60, %v533_v1 }
 0x230   :  { %v1371_v6 = vpop.f32.mrf.mxu1 }
 0x231   :  { %v552_v7 = vsel %vm520_vm1, %v466_v63, %v536_v2  ;;  %vm518_vm3 = vcmp.ge.f32.partialorder %v458_v3, 0.0  ;;  %v534_v8 = vmul.f32 0.01, %v458_v3  ;;  %v479_v16 = vadd.f32 %v1371_v6, %v1851_v56 }
 0x232   :  { %v566_v17 = vpack.c.bf16 %v552_v7, %v551_v5  ;;  %v470_v19 = vpop.f32.mrf.mxu1  ;;  %v1540_v7 = vld [vmem:[#allocation8 + $0x20] sm:$0xff]  }
 0x233   :  { %v550_v22 = vsel %vm518_vm3, %v458_v3, %v534_v8  ;;  %v471_v23 = vadd.f32 %v1851_v56, %v470_v19  ;;  %v539_v24 = vmul.f32 0.01, %v479_v16  ;;  %vm523_vm4 = vcmp.ge.f32.partialorder %v479_v16, 0.0 }
 0x234   :  { %v1372_v25 = vpop.f32.mrf.mxu1  ;;  %v565_v26 = vpack.c.bf16 %v550_v22, %v549_v21  ;;  %v638_v28 = vmul.bf16 %v1533_v18, %v566_v17 }
 0x235   :  { %v482_v27 = vadd.f32 %v1372_v25, %v1851_v56  ;;  %v537_v31 = vmul.f32 0.01, %v471_v23  ;;  %v555_v34 = vsel %vm523_vm4, %v479_v16, %v539_v24  ;;  %vm521_vm6 = vcmp.ge.f32.partialorder %v471_v23, 0.0  ;;  %v1541_v16 = vld [vmem:[#allocation8 + $0x28] sm:$0xff]  }
 0x236   :  { %v473_v29 = vpop.f32.mrf.mxu1  ;;  %v637_v30 = vmul.bf16 %v1537_v20, %v565_v26 }
 0x237   :  { %vm524_vm5 = vcmp.ge.f32.partialorder %v482_v27, 0.0  ;;  %v540_v32 = vmul.f32 0.01, %v482_v27  ;;  %v474_v33 = vadd.f32 %v1851_v56, %v473_v29  ;;  %v553_v43 = vsel %vm521_vm6, %v471_v23, %v537_v31 }
 0x238   :  { %v1375_v35 = vpop.f32.mrf.mxu1  ;;  %1397 = vmatprep.mubr.bf16.mxu0 %v637_v30 }
 0x239   :  { %v556_v36 = vsel %vm524_vm5, %v482_v27, %v540_v32  ;;  %vm522_vm7 = vcmp.ge.f32.partialorder %v474_v33, 0.0  ;;  %v538_v37 = vmul.f32 0.01, %v474_v33  ;;  %v495_v38 = vadd.f32 %v1375_v35, %v1851_v56  ;;  %1398 = vmatmul.mubr.bf16.vlgmr.msra.gmra.mxu0 %v638_v28 }
 0x23a   :  { %v486_v39 = vpop.f32.mrf.mxu1  ;;  %v568_v41 = vpack.c.bf16 %v556_v36, %v555_v34 }
 0x23b   :  { %v554_v44 = vsel %vm522_vm7, %v474_v33, %v538_v37  ;;  %v487_v52 = vadd.f32 %v1851_v56, %v486_v39  ;;  %v543_v55 = vmul.f32 0.01, %v495_v38  ;;  %vm527_vm8 = vcmp.ge.f32.partialorder %v495_v38, 0.0  ;;  %v1542_v33 = vld [vmem:[#allocation8 + $0x30] sm:$0xff]   ;;  %v1543_v37 = vld [vmem:[#allocation8 + $0x38] sm:$0xff]  }
 0x23c   :  { %v1376_v53 = vpop.f32.mrf.mxu1  ;;  %v567_v54 = vpack.c.bf16 %v554_v44, %v553_v43  ;;  %v640_v60 = vmul.bf16 %v1539_v42, %v568_v41  ;;  %v1874_v41 = vld [vmem:[#allocation11 + $0x30] sm:$0xff]   ;;  %v1878_v42 = vld [vmem:[#allocation11 + $0x28] sm:$0xff]   ;;  %v1882_v43 = vld [vmem:[#allocation11 + $0x20] sm:$0xff]  }
 0x23d   :  { %v498_v57 = vadd.f32 %v1376_v53, %v1851_v56  ;;  %v541_v61 = vmul.f32 0.01, %v487_v52  ;;  %vm525_vm10 = vcmp.ge.f32.partialorder %v487_v52, 0.0  ;;  %v559_v1 = vsel %vm527_vm8, %v495_v38, %v543_v55  ;;  %v1890_v44 = vld [vmem:[#allocation11 + $0x10] sm:$0xff]   ;;  %v1898_v53 = vld [vmem:[#allocation11] sm:$0xff]  }
 0x23e   :  { %v489_v58 = vpop.f32.mrf.mxu1  ;;  %v639_v59 = vmul.bf16 %v1538_v40, %v567_v54 }
 0x23f   :  { %vm528_vm9 = vcmp.ge.f32.partialorder %v498_v57, 0.0  ;;  %v544_v62 = vmul.f32 0.01, %v498_v57  ;;  %v490_v63 = vadd.f32 %v1851_v56, %v489_v58  ;;  %v557_v17 = vsel %vm525_vm10, %v487_v52, %v541_v61  ;;  %v1894_v52 = vld [vmem:[#allocation11 + $0x8] sm:$0xff]  }
 0x240   :  { %v1379_v0 = vpop.f32.mrf.mxu1  ;;  %1401 = vmatprep.mubr.bf16.mxu0 %v639_v59 }
 0x241   :  { %v560_v2 = vsel %vm528_vm9, %v498_v57, %v544_v62  ;;  %vm526_vm11 = vcmp.ge.f32.partialorder %v490_v63, 0.0  ;;  %v542_v3 = vmul.f32 0.01, %v490_v63  ;;  %1402 = vmatmul.mubr.bf16.gmra.mxu0 %v640_v60  ;;  %v511_v5 = vadd.f32 %v1379_v0, %v1851_v56 }
 0x242   :  { %v502_v6 = vpop.f32.mrf.mxu1  ;;  %v570_v8 = vpack.c.bf16 %v560_v2, %v559_v1 }
 0x243   :  { %v558_v18 = vsel %vm526_vm11, %v490_v63, %v542_v3  ;;  %v503_v19 = vadd.f32 %v1851_v56, %v502_v6  ;;  %vm531_vm12 = vcmp.ge.f32.partialorder %v511_v5, 0.0  ;;  %v547_v23 = vmul.f32 0.01, %v511_v5 }
 0x244   :  { %v1380_v20 = vpop.f32.mrf.mxu1  ;;  %v569_v21 = vpack.c.bf16 %v558_v18, %v557_v17  ;;  %v642_v26 = vmul.bf16 %v1541_v16, %v570_v8 }
 0x245   :  { %v514_v22 = vadd.f32 %v1380_v20, %v1851_v56  ;;  %v545_v27 = vmul.f32 0.01, %v503_v19  ;;  %vm529_vm14 = vcmp.ge.f32.partialorder %v503_v19, 0.0  ;;  %v563_v32 = vsel %vm531_vm12, %v511_v5, %v547_v23 }
 0x246   :  { %v505_v24 = vpop.f32.mrf.mxu1  ;;  %v641_v25 = vmul.bf16 %v1540_v7, %v569_v21 }
 0x247   :  { %vm532_vm13 = vcmp.ge.f32.partialorder %v514_v22, 0.0  ;;  %v548_v28 = vmul.f32 0.01, %v514_v22  ;;  %v506_v29 = vadd.f32 %v1851_v56, %v505_v24  ;;  %v561_v34 = vsel %vm529_vm14, %v503_v19, %v545_v27  ;;  %v1870_v56 = vld [vmem:[#allocation11 + $0x38] sm:$0xff]  }
 0x248   :  { %1405 = vmatprep.mubr.bf16.mxu0 %v641_v25  ;;  %1445 = vmatprep.subr.bf16.mxu0 %v1870_v56 }
 0x249   :  { %v564_v30 = vsel %vm532_vm13, %v514_v22, %v548_v28  ;;  %vm530_vm15 = vcmp.ge.f32.partialorder %v506_v29, 0.0  ;;  %v546_v31 = vmul.f32 0.01, %v506_v29  ;;  %1406 = vmatmul.mubr.bf16.gmra.mxu0 %v642_v26 }
 0x24a   :  { %v572_v36 = vpack.c.bf16 %v564_v30, %v563_v32  ;;  %1446 = vmatpush3.bf16.msra.mxu0 %v1870_v56 }
 0x24b   :  { %v562_v35 = vsel %vm530_vm15, %v506_v29, %v546_v31  ;;  %1447 = vmatprep.subr.bf16.mxu0 %v1874_v41 }
 0x24c   :  { %v571_v38 = vpack.c.bf16 %v562_v35, %v561_v34  ;;  %v644_v40 = vmul.bf16 %v1543_v37, %v572_v36 }
 0x24e   :  { %v643_v39 = vmul.bf16 %v1542_v33, %v571_v38  ;;  %1448 = vmatpush3.bf16.msra.mxu0 %v1874_v41 }
 0x24f   :  { %1449 = vmatprep.subr.bf16.mxu0 %v1878_v42 }
 0x250   :  { %1409 = vmatprep.mubr.bf16.mxu0 %v643_v39 }
 0x251   :  { %1410 = vmatmul.mubr.bf16.gmra.mxu0 %v644_v40 }
 0x252   :  { %1461 = vmatprep.mubr.bf16.mxu0 %v1799_v4  ;;  %1450 = vmatpush3.bf16.msra.mxu0 %v1878_v42  ;;  %v1886_v4 = vld [vmem:[#allocation11 + $0x18] sm:$0xff]  }
 0x253   :  { %1451 = vmatprep.subr.bf16.mxu0 %v1882_v43 }
 0x256   :  { %1452 = vmatpush3.bf16.msra.mxu0 %v1882_v43 }
 0x257   :  { %1453 = vmatprep.subr.bf16.mxu0 %v1886_v4 }
 0x25a   :  { %1454 = vmatpush3.bf16.msra.mxu0 %v1886_v4 }
 0x25b   :  { %1455 = vmatprep.subr.bf16.mxu0 %v1890_v44 }
 0x25e   :  { %1456 = vmatpush3.bf16.msra.mxu0 %v1890_v44 }
 0x25f   :  { %1457 = vmatprep.subr.bf16.mxu0 %v1894_v52 }
 0x262   :  { %1458 = vmatpush3.bf16.msra.mxu0 %v1894_v52 }
 0x263   :  { %1459 = vmatprep.subr.bf16.mxu0 %v1898_v53 }
 0x266   :  { %1460 = vmatpush3.bf16.msra.mxu0 %v1898_v53 }
 0x269   :  { %1462 = vmatmul.mubr.bf16.vlgmr.msra.gmra.mxu0 %v1802_v9 }
 0x26a   :  { %1465 = vmatprep.mubr.bf16.mxu0 %v1804_v10 }
 0x271   :  { %1466 = vmatmul.mubr.bf16.gmra.mxu0 %v1808_v11 }
 0x2f9   :  { %v1399_v54 = vpop.f32.mrf.mxu0 }
 0x2fb   :  { %v743_v55 = vpop.f32.mrf.mxu0 }
 0x2fd   :  { %v1400_v57 = vpop.f32.mrf.mxu0 }
 0x2fe   :  { %v807_v18 = vpack.c.bf16 %v1400_v57, %v1399_v54 }
 0x2ff   :  { %v746_v58 = vpop.f32.mrf.mxu0 }
 0x300   :  { %v806_v19 = vpack.c.bf16 %v746_v58, %v743_v55 }
 0x301   :  { %v1403_v59 = vpop.f32.mrf.mxu0 }
 0x303   :  { %v759_v60 = vpop.f32.mrf.mxu0 }
 0x305   :  { %v1404_v61 = vpop.f32.mrf.mxu0 }
 0x306   :  { %v809_v16 = vpack.c.bf16 %v1404_v61, %v1403_v59 }
 0x307   :  { %v762_v62 = vpop.f32.mrf.mxu0 }
 0x308   :  { %v808_v17 = vpack.c.bf16 %v762_v62, %v759_v60 }
 0x309   :  { %v1407_v63 = vpop.f32.mrf.mxu0 }
 0x30b   :  { %v775_v0 = vpop.f32.mrf.mxu0 }
 0x30d   :  { %v1408_v1 = vpop.f32.mrf.mxu0 }
 0x30e   :  { %v811_v11 = vpack.c.bf16 %v1408_v1, %v1407_v63 }
 0x30f   :  { %v778_v2 = vpop.f32.mrf.mxu0 }
 0x310   :  { %v810_v8 = vpack.c.bf16 %v778_v2, %v775_v0 }
 0x311   :  { %v1411_v3 = vpop.f32.mrf.mxu0 }
 0x313   :  { %v791_v5 = vpop.f32.mrf.mxu0 }
 0x315   :  { %v1412_v6 = vpop.f32.mrf.mxu0 }
 0x316   :  { %v813_v9 = vpack.c.bf16 %v1412_v6, %v1411_v3 }
 0x317   :  { %v794_v7 = vpop.f32.mrf.mxu0 }
 0x318   :  { %v812_v10 = vpack.c.bf16 %v794_v7, %v791_v5  ;;  %1413 = vmatprep.subr.bf16.mxu1 %v813_v9 }
 0x319   :  { %1414 = vmatpush3.bf16.msra.mxu1 %v813_v9 }
 0x31a   :  { %1415 = vmatprep.subr.bf16.mxu1 %v812_v10 }
 0x31d   :  { %1416 = vmatpush3.bf16.msra.mxu1 %v812_v10 }
 0x31e   :  { %1417 = vmatprep.subr.bf16.mxu1 %v811_v11 }
 0x321   :  { %1418 = vmatpush3.bf16.msra.mxu1 %v811_v11 }
 0x322   :  { %1419 = vmatprep.subr.bf16.mxu1 %v810_v8 }
 0x325   :  { %1420 = vmatpush3.bf16.msra.mxu1 %v810_v8 }
 0x326   :  { %1421 = vmatprep.subr.bf16.mxu1 %v809_v16 }
 0x329   :  { %1422 = vmatpush3.bf16.msra.mxu1 %v809_v16 }
 0x32a   :  { %1423 = vmatprep.subr.bf16.mxu1 %v808_v17 }
 0x32d   :  { %1424 = vmatpush3.bf16.msra.mxu1 %v808_v17 }
 0x32e   :  { %1425 = vmatprep.subr.bf16.mxu1 %v807_v18 }
 0x331   :  { %1426 = vmatpush3.bf16.msra.mxu1 %v807_v18 }
 0x332   :  { %1427 = vmatprep.subr.bf16.mxu1 %v806_v19 }
 0x335   :  { %1428 = vmatpush3.bf16.msra.mxu1 %v806_v19 }
 0x336   :  { %1477 = vmatprep.subr.bf16.mxu1 %v1870_v56 }
 0x338   :  { %1430 = vmatmul.mubr.bf16.vlgmr.msra.gmra.mxu1 %v1826_v45  ;;  %v1463_v45 = vpop.f32.mrf.mxu0 }
 0x339   :  { %1485 = vmatpush3.bf16.msra.mxu1 %v1870_v56  ;;  %1433 = vmatprep.mubr.bf16.mxu1 %v1828_v46 }
 0x33a   :  { %1478 = vmatprep.subr.bf16.mxu1 %v1874_v41  ;;  %v1071_v46 = vpop.f32.mrf.mxu0 }
 0x33d   :  { %1486 = vmatpush3.bf16.msra.mxu1 %v1874_v41 }
 0x33e   :  { %1479 = vmatprep.subr.bf16.mxu1 %v1878_v42 }
 0x340   :  { %1434 = vmatmul.mubr.bf16.gmra.mxu1 %v1832_v47  ;;  %v1464_v47 = vpop.f32.mrf.mxu0 }
 0x341   :  { %1487 = vmatpush3.bf16.msra.mxu1 %v1878_v42  ;;  %1437 = vmatprep.mubr.bf16.mxu1 %v1834_v48 }
 0x342   :  { %1480 = vmatprep.subr.bf16.mxu1 %v1882_v43  ;;  %v1074_v48 = vpop.f32.mrf.mxu0 }
 0x345   :  { %1488 = vmatpush3.bf16.msra.mxu1 %v1882_v43 }
 0x346   :  { %1481 = vmatprep.subr.bf16.mxu1 %v1886_v4 }
 0x348   :  { %1438 = vmatmul.mubr.bf16.gmra.mxu1 %v1838_v49  ;;  %v1935_v49 = vld [vmem:[%s1983_s6] ss:$0 sm:$0xff]  ;;  %s1710_s6 = smov [#allocation13]  }
 0x349   :  { %1489 = vmatpush3.bf16.msra.mxu1 %v1886_v4  ;;  %1441 = vmatprep.mubr.bf16.mxu1 %v1840_v50 }
 0x34a   :  { %1482 = vmatprep.subr.bf16.mxu1 %v1890_v44 }
 0x34d   :  { %1490 = vmatpush3.bf16.msra.mxu1 %v1890_v44 }
 0x34e   :  { %1483 = vmatprep.subr.bf16.mxu1 %v1894_v52 }
 0x350   :  { %1442 = vmatmul.mubr.bf16.gmra.mxu1 %v1844_v51 }
 0x351   :  { %1491 = vmatpush3.bf16.msra.mxu1 %v1894_v52  ;;  %1469 = vmatprep.mubr.bf16.mxu1 %v1810_v12  ;;  %v1940_v12 = vld [vmem:[%s1985_s8] ss:$0 sm:$0xff]  ;;  %s1171_s8 = sshll.u32 %s1710_s6, 4  ;;  %s1172_s8 = int_to_ptr.vmem [resolvable:$true] %s1171_s8 }
 0x352   :  { %1484 = vmatprep.subr.bf16.mxu1 %v1898_v53  ;;  %v1072_v23 = vadd.f32 %v1940_v12, %v1071_v46  ;;  %v1083_v30 = vadd.f32 %v1464_v47, %v1940_v12  ;;  %v1075_v36 = vadd.f32 %v1940_v12, %v1074_v48  ;;  %s1672_s19 = scalar_lea.vmem %s1172_s8, 2048  ;;  %p1677_p3 = scmp.lt.s32.totalorder %s1172_s8, %s1172_s8 }
 0x353   :  { %p1673_p2 = scmp.ne.s32.totalorder %s1172_s8, %s1672_s19  ;;  %p1678_p4 = scmp.lt.s32.totalorder %s1672_s19, %s1672_s19 }
 0x355   :  { %1492 = vmatpush3.bf16.msra.mxu1 %v1898_v53  ;;  %p1679_p5 = por %p1678_p4, %p1677_p3 }
 0x357   :  { %p1680_p6 = pnand %p1679_p5, %p1673_p2 }
 0x358   :  { %1470 = vmatmul.mubr.bf16.vlgmr.msra.gmra.mxu1 %v1814_v13 }
 0x359   :  { %1473 = vmatprep.mubr.bf16.mxu1 %v1816_v14  ;;  %v1467_v14 = vpop.f32.mrf.mxu0 }
 0x35a   :  { %v1096_v42 = vadd.f32 %v1467_v14, %v1940_v12 }
 0x35b   :  { %v1087_v27 = vpop.f32.mrf.mxu0 }
 0x35c   :  { %v1088_v54 = vadd.f32 %v1940_v12, %v1087_v27 }
 0x35d   :  { %v1468_v40 = vpop.f32.mrf.mxu0 }
 0x35e   :  { %v1099_v62 = vadd.f32 %v1468_v40, %v1940_v12 }
 0x35f   :  { %v1090_v59 = vpop.f32.mrf.mxu0 }
 0x360   :  { %1474 = vmatmul.mubr.bf16.gmra.mxu1 %v1820_v15  ;;  %v1080_v15 = vadd.f32 %v1463_v45, %v1940_v12  ;;  %v1091_v5 = vadd.f32 %v1940_v12, %v1090_v59 }
 0x3f8   :  { %v1431_v50 = vpop.f32.mrf.mxu1 }
 0x3f9   :  { %v864_v13 = vadd.f32 %v1431_v50, %v1935_v49 }
 0x3fa   :  { %v855_v51 = vpop.f32.mrf.mxu1 }
 0x3fb   :  { %vm920_vm0 = vcmp.ge.f32.partialorder %v864_v13, 0.0  ;;  %v936_v20 = vmul.f32 0.01, %v864_v13  ;;  %v856_v21 = vadd.f32 %v1935_v49, %v855_v51 }
 0x3fc   :  { %v1432_v22 = vpop.f32.mrf.mxu1 }
 0x3fd   :  { %vm918_vm1 = vcmp.ge.f32.partialorder %v856_v21, 0.0  ;;  %v934_v24 = vmul.f32 0.01, %v856_v21  ;;  %v952_v25 = vsel %vm920_vm0, %v864_v13, %v936_v20  ;;  %v867_v26 = vadd.f32 %v1432_v22, %v1935_v49 }
 0x3fe   :  { %v1136_v28 = vadd.f32 %v1080_v15, %v952_v25  ;;  %v858_v29 = vpop.f32.mrf.mxu1 }
 0x3ff   :  { %vm921_vm2 = vcmp.ge.f32.partialorder %v867_v26, 0.0  ;;  %v937_v31 = vmul.f32 0.01, %v867_v26  ;;  %v950_v32 = vsel %vm918_vm1, %v856_v21, %v934_v24  ;;  %v859_v33 = vadd.f32 %v1935_v49, %v858_v29 }
 0x400   :  { %1152 = vst [vmem:[#allocation13 + $0x10] sm:$0xff] %v1136_v28  ;;  %v1134_v34 = vadd.f32 %v1072_v23, %v950_v32  ;;  %v1435_v35 = vpop.f32.mrf.mxu1 }
 0x401   :  { %vm919_vm3 = vcmp.ge.f32.partialorder %v859_v33, 0.0  ;;  %v935_v37 = vmul.f32 0.01, %v859_v33  ;;  %v953_v38 = vsel %vm921_vm2, %v867_v26, %v937_v31  ;;  %v880_v39 = vadd.f32 %v1435_v35, %v1935_v49 }
 0x402   :  { %1150 = vst [vmem:[#allocation13] sm:$0xff] %v1134_v34  ;;  %v1137_v56 = vadd.f32 %v1083_v30, %v953_v38  ;;  %v871_v41 = vpop.f32.mrf.mxu1 }
 0x403   :  { %vm924_vm4 = vcmp.ge.f32.partialorder %v880_v39, 0.0  ;;  %v940_v43 = vmul.f32 0.01, %v880_v39  ;;  %v951_v4 = vsel %vm919_vm3, %v859_v33, %v935_v37  ;;  %v872_v44 = vadd.f32 %v1935_v49, %v871_v41 }
 0x404   :  { %1153 = vst [vmem:[#allocation13 + $0x18] sm:$0xff] %v1137_v56  ;;  %v1135_v52 = vadd.f32 %v1075_v36, %v951_v4  ;;  %v1436_v53 = vpop.f32.mrf.mxu1 }
 0x405   :  { %vm922_vm5 = vcmp.ge.f32.partialorder %v872_v44, 0.0  ;;  %v938_v55 = vmul.f32 0.01, %v872_v44  ;;  %v956_v57 = vsel %vm924_vm4, %v880_v39, %v940_v43  ;;  %v883_v58 = vadd.f32 %v1436_v53, %v1935_v49 }
 0x406   :  { %1151 = vst [vmem:[#allocation13 + $0x8] sm:$0xff] %v1135_v52  ;;  %v1140_v60 = vadd.f32 %v1096_v42, %v956_v57  ;;  %v874_v61 = vpop.f32.mrf.mxu1 }
 0x407   :  { %vm925_vm6 = vcmp.ge.f32.partialorder %v883_v58, 0.0  ;;  %v941_v63 = vmul.f32 0.01, %v883_v58  ;;  %v954_v0 = vsel %vm922_vm5, %v872_v44, %v938_v55  ;;  %v875_v1 = vadd.f32 %v1935_v49, %v874_v61 }
 0x408   :  { %1156 = vst [vmem:[#allocation13 + $0x30] sm:$0xff] %v1140_v60  ;;  %v1138_v2 = vadd.f32 %v1088_v54, %v954_v0  ;;  %v1439_v3 = vpop.f32.mrf.mxu1 }
 0x409   :  { %vm923_vm7 = vcmp.ge.f32.partialorder %v875_v1, 0.0  ;;  %v939_v6 = vmul.f32 0.01, %v875_v1  ;;  %v957_v9 = vsel %vm925_vm6, %v883_v58, %v941_v63  ;;  %v896_v19 = vadd.f32 %v1439_v3, %v1935_v49 }
 0x40a   :  { %1154 = vst [vmem:[#allocation13 + $0x20] sm:$0xff] %v1138_v2  ;;  %v1141_v7 = vadd.f32 %v1099_v62, %v957_v9  ;;  %v887_v10 = vpop.f32.mrf.mxu1 }
 0x40b   :  { %v955_v11 = vsel %vm923_vm7, %v875_v1, %v939_v6  ;;  %v888_v46 = vadd.f32 %v1935_v49, %v887_v10  ;;  %v944_v48 = vmul.f32 0.01, %v896_v19  ;;  %vm928_vm8 = vcmp.ge.f32.partialorder %v896_v19, 0.0 }
 0x40c   :  { %1157 = vst [vmem:[#allocation13 + $0x38] sm:$0xff] %v1141_v7  ;;  %v1139_v8 = vadd.f32 %v1091_v5, %v955_v11  ;;  %v1440_v16 = vpop.f32.mrf.mxu1 }
 0x40d   :  { %v899_v50 = vadd.f32 %v1440_v16, %v1935_v49  ;;  %v942_v14 = vmul.f32 0.01, %v888_v46  ;;  %vm926_vm9 = vcmp.ge.f32.partialorder %v888_v46, 0.0  ;;  %v960_v23 = vsel %vm928_vm8, %v896_v19, %v944_v48 }
 0x40e   :  { %1155 = vst [vmem:[#allocation13 + $0x28] sm:$0xff] %v1139_v8  ;;  %v890_v17 = vpop.f32.mrf.mxu1 }
 0x40f   :  { %v891_v51 = vadd.f32 %v1935_v49, %v890_v17  ;;  %v945_v21 = vmul.f32 0.01, %v899_v50  ;;  %vm929_vm10 = vcmp.ge.f32.partialorder %v899_v50, 0.0  ;;  %v958_v29 = vsel %vm926_vm9, %v888_v46, %v942_v14 }
 0x410   :  { %v1443_v18 = vpop.f32.mrf.mxu1 }
 0x411   :  { %v912_v22 = vadd.f32 %v1443_v18, %v1935_v49  ;;  %v943_v27 = vmul.f32 0.01, %v891_v51  ;;  %vm927_vm11 = vcmp.ge.f32.partialorder %v891_v51, 0.0  ;;  %v961_v35 = vsel %vm929_vm10, %v899_v50, %v945_v21 }
 0x412   :  { %v903_v45 = vpop.f32.mrf.mxu1 }
 0x413   :  { %v904_v28 = vadd.f32 %v1935_v49, %v903_v45  ;;  %v948_v33 = vmul.f32 0.01, %v912_v22  ;;  %vm932_vm12 = vcmp.ge.f32.partialorder %v912_v22, 0.0  ;;  %v959_v56 = vsel %vm927_vm11, %v891_v51, %v943_v27 }
 0x414   :  { %v1444_v47 = vpop.f32.mrf.mxu1 }
 0x415   :  { %v915_v34 = vadd.f32 %v1444_v47, %v1935_v49  ;;  %v946_v39 = vmul.f32 0.01, %v904_v28  ;;  %vm930_vm13 = vcmp.ge.f32.partialorder %v904_v28, 0.0  ;;  %v964_v44 = vsel %vm932_vm12, %v912_v22, %v948_v33 }
 0x416   :  { %v906_v13 = vpop.f32.mrf.mxu1 }
 0x417   :  { %v907_v40 = vadd.f32 %v1935_v49, %v906_v13  ;;  %v949_v4 = vmul.f32 0.01, %v915_v34  ;;  %vm933_vm14 = vcmp.ge.f32.partialorder %v915_v34, 0.0  ;;  %v962_v57 = vsel %vm930_vm13, %v904_v28, %v946_v39 }
 0x418   :  { %v1471_v15 = vpop.f32.mrf.mxu1 }
 0x419   :  { %v1112_v20 = vadd.f32 %v1471_v15, %v1940_v12  ;;  %v947_v55 = vmul.f32 0.01, %v907_v40  ;;  %vm931_vm15 = vcmp.ge.f32.partialorder %v907_v40, 0.0  ;;  %v965_v60 = vsel %vm933_vm14, %v915_v34, %v949_v4 }
 0x41a   :  { %v1103_v24 = vpop.f32.mrf.mxu1 }
 0x41b   :  { %v1144_v25 = vadd.f32 %v1112_v20, %v960_v23  ;;  %v1104_v26 = vadd.f32 %v1940_v12, %v1103_v24  ;;  %v963_v0 = vsel %vm931_vm15, %v907_v40, %v947_v55 }
 0x41c   :  { %v1472_v30 = vpop.f32.mrf.mxu1 }
 0x41d   :  { %1160 = vst [vmem:[#allocation13 + $0x50] sm:$0xff] %v1144_v25  ;;  %v1142_v31 = vadd.f32 %v1104_v26, %v958_v29  ;;  %v1115_v32 = vadd.f32 %v1472_v30, %v1940_v12 }
 0x41e   :  { %v1106_v36 = vpop.f32.mrf.mxu1 }
 0x41f   :  { %1158 = vst [vmem:[#allocation13 + $0x40] sm:$0xff] %v1142_v31  ;;  %v1145_v37 = vadd.f32 %v1115_v32, %v961_v35  ;;  %v1107_v38 = vadd.f32 %v1940_v12, %v1106_v36 }
 0x420   :  { %v1475_v41 = vpop.f32.mrf.mxu1 }
 0x421   :  { %1161 = vst [vmem:[#allocation13 + $0x58] sm:$0xff] %v1145_v37  ;;  %v1143_v42 = vadd.f32 %v1107_v38, %v959_v56  ;;  %v1128_v43 = vadd.f32 %v1475_v41, %v1940_v12 }
 0x422   :  { %v1119_v52 = vpop.f32.mrf.mxu1 }
 0x423   :  { %1159 = vst [vmem:[#allocation13 + $0x48] sm:$0xff] %v1143_v42  ;;  %v1148_v53 = vadd.f32 %v1128_v43, %v964_v44  ;;  %v1120_v54 = vadd.f32 %v1940_v12, %v1119_v52 }
 0x424   :  { %v1476_v58 = vpop.f32.mrf.mxu1 }
 0x425   :  { %1164 = vst [vmem:[#allocation13 + $0x70] sm:$0xff] %v1148_v53  ;;  %v1146_v49 = vadd.f32 %v1120_v54, %v962_v57  ;;  %v1131_v59 = vadd.f32 %v1476_v58, %v1940_v12 }
 0x426   :  { %v1122_v61 = vpop.f32.mrf.mxu1 }
 0x427   :  { %1162 = vst [vmem:[#allocation13 + $0x60] sm:$0xff] %v1146_v49  ;;  %v1149_v62 = vadd.f32 %v1131_v59, %v965_v60  ;;  %v1123_v63 = vadd.f32 %v1940_v12, %v1122_v61 }
 0x429   :  { %1165 = vst [vmem:[#allocation13 + $0x78] sm:$0xff] %v1149_v62  ;;  %v1147_v1 = vadd.f32 %v1123_v63, %v963_v0 }
 0x42b   :  { %1163 = vst [vmem:[#allocation13 + $0x68] sm:$0xff] %v1147_v1 }
 0x42c   :  { %1683 = shalt.err (!%p1680_p6)
}
 0x42d   :  { %s1711_s20 = smov 128   ;;  %s1712_s21 = smov 8  }
 0x42e   :  { %1177 = dma.vmem_to_hbm [thread:$0]  %s1172_s8, 2048, %s1986_s9, [#allocation4], %s1711_s20, %s1711_s20, %s1712_s21  }
 0x42f   :  { %1700 = dma.done.wait [#allocation4], 2048  }
 0x430   :  { %1701 = vsyncadd [#allocation4], 4294965248 }
 0x431   :  { %1181 = vsyncpa [#allocation3], 1 }
 0x432   :  { %1182 = vsyncpa [#allocation6], 1 }
 0x433   :  { %1183 = vsyncpa [#allocation9], 1 }
 0x434   :  { %1184 = vsyncpa [#allocation12], 1 }
 0x435   :  { %1185 = vsyncpa [#allocation4], 1 }

</bundles_post_ra>
